<compile_context>
chip_gen: v7x
topology: tpu7x:2x2x1
jax: 0.10.0
libtpu: 0.0.40
codegen_flags: <defaults>
</compile_context>

<pallas_src>
import functools

import jax
import jax.numpy as jnp
from jax import lax
from jax.experimental import pallas as pl
from jax.experimental.pallas import tpu as pltpu

_NEG_BIG = jnp.float32(-1e30)  # "minus infinity" that stays finite under + gumbel


def _categorical_policy_kernel(state_ref, wt_ref, b_ref, g_ref,
                               sample_ref, probs_ref, stats_ref):
    # logits = state @ W^T + b   (weight already transposed to (D, A_pad)).
    logits = jnp.dot(state_ref[...], wt_ref[...],
                     preferred_element_type=jnp.float32) + b_ref[...]

    # Numerically-stable softmax with a single exp.
    m = jnp.max(logits, axis=-1, keepdims=True)
    shifted = logits - m
    e = jnp.exp(shifted)
    s = jnp.sum(e, axis=-1, keepdims=True)
    log_s = jnp.log(s)
    log_probs = shifted - log_s
    probs = e / s                      # exact divide -> rows sum to 1

    # Gumbel-max sampling == OneHotCategorical(logits=logits).sample().
    z = logits + g_ref[...]
    zmax = jnp.max(z, axis=-1, keepdims=True)
    col = lax.broadcasted_iota(jnp.int32, z.shape, 1)
    # Lowest-index tie-break -> guaranteed exactly one hot per row.  Padded
    # columns sit at ~-1e30 and can never win.
    masked_col = jnp.where(z >= zmax, col, jnp.int32(z.shape[-1]))
    winner = jnp.min(masked_col, axis=-1, keepdims=True)
    one_hot = (col == winner).astype(jnp.float32)

    log_prob = jnp.sum(one_hot * log_probs, axis=-1, keepdims=True)
    entropy = log_s - jnp.sum(probs * shifted, axis=-1, keepdims=True)

    sample_ref[...] = one_hot
    probs_ref[...] = probs

    # Lane-dense stats slab: column 0 = log_prob, column 1 = entropy, rest zero.
    scol = lax.broadcasted_iota(jnp.int32, stats_ref.shape, 1)
    stats_ref[...] = jnp.where(scol == 0, log_prob,
                               jnp.where(scol == 1, entropy, 0.0))


def _round_up(x, m):
    return ((x + m - 1) // m) * m


@functools.partial(jax.jit, static_argnames=("tb",))
def categorical_policy_forward(state, weight, bias, key, *, tb=512):
    """Forward pass of CategoricalPolicy.

    state:  (B, D) float; weight: (A, D) float (PyTorch Linear layout);
    bias: (A,) float; key: jax PRNG key for the sample.
    Returns (sample_one_hot (B, A), probs (B, A), log_prob (B,), entropy (B,)).
    """
    B, D = state.shape
    A = weight.shape[0]

    A_pad = _round_up(max(A, 1), 128)
    TB = min(tb, _round_up(B, 8))
    B_pad = _round_up(B, TB)

    state_f = state.astype(jnp.float32)
    if B_pad != B:
        state_f = jnp.pad(state_f, ((0, B_pad - B), (0, 0)))

    # Pre-transposed, zero-padded weight: (D, A_pad).
    wt_p = weight.astype(jnp.float32).T
    if A_pad != A:
        wt_p = jnp.pad(wt_p, ((0, 0), (0, A_pad - A)))

    # Padded action slots get a huge negative bias -> zero probability.
    bias_p = bias.astype(jnp.float32).reshape(1, A)
    if A_pad != A:
        bias_p = jnp.pad(bias_p, ((0, 0), (0, A_pad - A)),
                         constant_values=_NEG_BIG)

    # Gumbel noise drawn outside the kernel (tiling-safe RNG).
    gumbel = jax.random.gumbel(key, (B_pad, A_pad), dtype=jnp.float32)

    grid = (B_pad // TB,)

    grid_spec = pltpu.PrefetchScalarGridSpec(
        num_scalar_prefetch=0,
        grid=grid,
        in_specs=[
            pl.BlockSpec((TB, D), lambda i: (i, 0)),       # state tile
            pl.BlockSpec((D, A_pad), lambda i: (0, 0)),    # transposed weight (resident)
            pl.BlockSpec((1, A_pad), lambda i: (0, 0)),    # bias (resident)
            pl.BlockSpec((TB, A_pad), lambda i: (i, 0)),   # gumbel noise tile
        ],
        out_specs=[
            pl.BlockSpec((TB, A_pad), lambda i: (i, 0)),   # one-hot sample
            pl.BlockSpec((TB, A_pad), lambda i: (i, 0)),   # probs
            pl.BlockSpec((TB, 128), lambda i: (i, 0)),     # stats (logp, entropy)
        ],
    )

    sample, probs, stats = pl.pallas_call(
        _categorical_policy_kernel,
        grid_spec=grid_spec,
        out_shape=(
            jax.ShapeDtypeStruct((B_pad, A_pad), jnp.float32),
            jax.ShapeDtypeStruct((B_pad, A_pad), jnp.float32),
            jax.ShapeDtypeStruct((B_pad, 128), jnp.float32),
        ),
        compiler_params=pltpu.CompilerParams(
            dimension_semantics=("parallel",)),
    )(state_f, wt_p, bias_p, gumbel)

    return (sample[:B, :A], probs[:B, :A], stats[:B, 0], stats[:B, 1])


def custom_ortho_init(key, shape, gain):
    """Deterministic orthogonal init (matches torch orthogonal_ semantics)."""
    rows, cols = shape
    flat = jax.random.normal(key, (rows, cols), dtype=jnp.float32)
    a = flat if rows >= cols else flat.T
    q, r = jnp.linalg.qr(a)
    q = q * jnp.sign(jnp.diag(r))
    if rows < cols:
        q = q.T
    return gain * q[:rows, :cols]


if __name__ == "__main__":
    # Shapes implied by the module: Linear(num_inputs -> num_actions).
    B, num_inputs, num_actions = 8, 32, 16

    key = jax.random.PRNGKey(0)
    k_state, k_w, k_sample = jax.random.split(key, 3)

    state = jax.random.normal(k_state, (B, num_inputs), dtype=jnp.float32)
    weight = custom_ortho_init(k_w, (num_actions, num_inputs), gain=0.01)
    bias = jnp.zeros((num_actions,), dtype=jnp.float32)

    sample, probs, log_prob, entropy = categorical_policy_forward(
        state, weight, bias, k_sample)
    jax.block_until_ready((sample, probs, log_prob, entropy))

    # Sanity checks against plain-JAX reference.
    assert sample.shape == (B, num_actions)
    assert probs.shape == (B, num_actions)
    assert log_prob.shape == (B,)
    assert entropy.shape == (B,)
    assert bool(jnp.allclose(jnp.sum(sample, axis=-1), 1.0))

    logits_ref = state @ weight.T + bias
    lp_ref = jax.nn.log_softmax(logits_ref, axis=-1)
    probs_ref = jnp.exp(lp_ref)
    ent_ref = -jnp.sum(probs_ref * lp_ref, axis=-1)
    logp_ref = jnp.sum(sample * lp_ref, axis=-1)   # log_prob of the drawn sample

    assert bool(jnp.allclose(jnp.sum(probs, axis=-1), 1.0, atol=1e-5))
    assert bool(jnp.allclose(probs, probs_ref, atol=1e-5))
    assert bool(jnp.allclose(entropy, ent_ref, atol=1e-5))
    assert bool(jnp.allclose(log_prob, logp_ref, atol=1e-5))

    print("KERNEL_OK")
</pallas_src>

<mosaic_0001>
module attributes {stable_mosaic.version = 11 : i64} {
  func.func @_categorical_policy_kernel(%arg0: i32, %arg1: memref<8x32xf32, #tpu.memory_space<vmem>>, %arg2: memref<32x128xf32, #tpu.memory_space<vmem>>, %arg3: memref<1x128xf32, #tpu.memory_space<vmem>>, %arg4: memref<8x128xf32, #tpu.memory_space<vmem>>, %arg5: memref<8x128xf32, #tpu.memory_space<vmem>>, %arg6: memref<8x128xf32, #tpu.memory_space<vmem>>, %arg7: memref<8x128xf32, #tpu.memory_space<vmem>>) attributes {dimension_semantics = [#tpu.dimension_semantics<parallel>], iteration_bounds = array<i64: 1>, scalar_prefetch = 0 : i64, scratch_operands = 0 : i64, tpu.core_type = #tpu.core_type<tc>, window_params = [{transform_indices = @transform_0, window_bounds = array<i64: 8, 32>}, {pipeline_mode = #tpu.pipeline_mode<synchronous>, transform_indices = @transform_1, window_bounds = array<i64: 32, 128>}, {pipeline_mode = #tpu.pipeline_mode<synchronous>, transform_indices = @transform_2, window_bounds = array<i64: 1, 128>}, {transform_indices = @transform_3, window_bounds = array<i64: 8, 128>}, {transform_indices = @transform_4, window_bounds = array<i64: 8, 128>}, {transform_indices = @transform_5, window_bounds = array<i64: 8, 128>}, {transform_indices = @transform_6, window_bounds = array<i64: 8, 128>}]} {
    %c0 = arith.constant 0 : index
    %c0_0 = arith.constant 0 : index
    %0 = vector.load %arg1[%c0, %c0_0] : memref<8x32xf32, #tpu.memory_space<vmem>>, vector<8x32xf32>
    %c0_1 = arith.constant 0 : index
    %c0_2 = arith.constant 0 : index
    %1 = vector.load %arg2[%c0_1, %c0_2] : memref<32x128xf32, #tpu.memory_space<vmem>>, vector<32x128xf32>
    %cst = arith.constant dense<0.000000e+00> : vector<8x128xf32>
    %2 = tpu.matmul %0, %1, %cst {dimension_numbers = #tpu.dot_dimension_numbers<[1], [0], [0], [1], [0, 0, 1, 1], [], []>} : vector<8x32xf32>, vector<32x128xf32>, vector<8x128xf32> -> vector<8x128xf32>
    %c0_3 = arith.constant 0 : index
    %c0_4 = arith.constant 0 : index
    %3 = vector.load %arg3[%c0_3, %c0_4] : memref<1x128xf32, #tpu.memory_space<vmem>>, vector<1x128xf32>
    %4 = vector.broadcast %3 : vector<1x128xf32> to vector<8x128xf32>
    %5 = arith.addf %2, %4 : vector<8x128xf32>
    %cst_5 = arith.constant dense<0xFF800000> : vector<8xf32>
    %6 = vector.multi_reduction <maximumf>, %5, %cst_5 [1] : vector<8x128xf32> to vector<8xf32>
    %7 = vector.shape_cast %6 : vector<8xf32> to vector<8x1xf32>
    %8 = vector.broadcast %7 : vector<8x1xf32> to vector<8x128xf32>
    %9 = arith.subf %5, %8 : vector<8x128xf32>
    %10 = math.exp %9 : vector<8x128xf32>
    %cst_6 = arith.constant dense<0.000000e+00> : vector<8xf32>
    %11 = vector.multi_reduction <add>, %10, %cst_6 [1] : vector<8x128xf32> to vector<8xf32>
    %12 = vector.shape_cast %11 : vector<8xf32> to vector<8x1xf32>
    %13 = math.log %12 : vector<8x1xf32>
    %14 = vector.broadcast %13 : vector<8x1xf32> to vector<8x128xf32>
    %15 = arith.subf %9, %14 : vector<8x128xf32>
    %16 = vector.broadcast %12 : vector<8x1xf32> to vector<8x128xf32>
    %17 = arith.divf %10, %16 : vector<8x128xf32>
    %c0_7 = arith.constant 0 : index
    %c0_8 = arith.constant 0 : index
    %18 = vector.load %arg4[%c0_7, %c0_8] : memref<8x128xf32, #tpu.memory_space<vmem>>, vector<8x128xf32>
    %19 = arith.addf %5, %18 : vector<8x128xf32>
    %cst_9 = arith.constant dense<0xFF800000> : vector<8xf32>
    %20 = vector.multi_reduction <maximumf>, %19, %cst_9 [1] : vector<8x128xf32> to vector<8xf32>
    %21 = vector.shape_cast %20 : vector<8xf32> to vector<8x1xf32>
    %22 = tpu.iota {dimensions = array<i32: 1>} : vector<8x128xi32>
    %23 = vector.broadcast %21 : vector<8x1xf32> to vector<8x128xf32>
    %24 = arith.cmpf oge, %19, %23 : vector<8x128xf32>
    %c128_i32 = arith.constant 128 : i32
    %25 = vector.broadcast %c128_i32 : i32 to vector<8x128xi32>
    %26 = arith.select %24, %22, %25 : vector<8x128xi1>, vector<8x128xi32>
    %cst_10 = arith.constant dense<2147483647> : vector<8xi32>
    %27 = vector.multi_reduction <minsi>, %26, %cst_10 [1] : vector<8x128xi32> to vector<8xi32>
    %28 = vector.shape_cast %27 : vector<8xi32> to vector<8x1xi32>
    %29 = vector.broadcast %28 : vector<8x1xi32> to vector<8x128xi32>
    %30 = arith.cmpi eq, %22, %29 : vector<8x128xi32>
    %31 = arith.extui %30 : vector<8x128xi1> to vector<8x128xi32>
    %32 = arith.sitofp %31 : vector<8x128xi32> to vector<8x128xf32>
    %33 = arith.mulf %32, %15 : vector<8x128xf32>
    %cst_11 = arith.constant dense<0.000000e+00> : vector<8xf32>
    %34 = vector.multi_reduction <add>, %33, %cst_11 [1] : vector<8x128xf32> to vector<8xf32>
    %35 = vector.shape_cast %34 : vector<8xf32> to vector<8x1xf32>
    %36 = arith.mulf %17, %9 : vector<8x128xf32>
    %cst_12 = arith.constant dense<0.000000e+00> : vector<8xf32>
    %37 = vector.multi_reduction <add>, %36, %cst_12 [1] : vector<8x128xf32> to vector<8xf32>
    %38 = vector.shape_cast %37 : vector<8xf32> to vector<8x1xf32>
    %39 = arith.subf %13, %38 : vector<8x1xf32>
    %c0_13 = arith.constant 0 : index
    %c0_14 = arith.constant 0 : index
    %40 = vector.load %arg5[%c0_13, %c0_14] : memref<8x128xf32, #tpu.memory_space<vmem>>, vector<8x128xf32>
    tpu.vector_store %arg5[%c0_13, %c0_14], %32 {strides = array<i32>} : memref<8x128xf32, #tpu.memory_space<vmem>>, vector<8x128xf32>,
    %c0_15 = arith.constant 0 : index
    %c0_16 = arith.constant 0 : index
    %41 = vector.load %arg6[%c0_15, %c0_16] : memref<8x128xf32, #tpu.memory_space<vmem>>, vector<8x128xf32>
    tpu.vector_store %arg6[%c0_15, %c0_16], %17 {strides = array<i32>} : memref<8x128xf32, #tpu.memory_space<vmem>>, vector<8x128xf32>,
    %42 = tpu.iota {dimensions = array<i32: 1>} : vector<8x128xi32>
    %c0_i32 = arith.constant 0 : i32
    %43 = vector.broadcast %c0_i32 : i32 to vector<8x128xi32>
    %44 = arith.cmpi eq, %42, %43 : vector<8x128xi32>
    %c1_i32 = arith.constant 1 : i32
    %45 = vector.broadcast %c1_i32 : i32 to vector<8x128xi32>
    %46 = arith.cmpi eq, %42, %45 : vector<8x128xi32>
    %cst_17 = arith.constant 0.000000e+00 : f32
    %47 = vector.shape_cast %39 : vector<8x1xf32> to vector<8x1xf32>
    %48 = vector.broadcast %47 : vector<8x1xf32> to vector<8x128xf32>
    %49 = vector.broadcast %cst_17 : f32 to vector<8x128xf32>
    %50 = arith.select %46, %48, %49 : vector<8x128xi1>, vector<8x128xf32>
    %51 = vector.shape_cast %35 : vector<8x1xf32> to vector<8x1xf32>
    %52 = vector.broadcast %51 : vector<8x1xf32> to vector<8x128xf32>
    %53 = arith.select %44, %52, %50 : vector<8x128xi1>, vector<8x128xf32>
    %c0_18 = arith.constant 0 : index
    %c0_19 = arith.constant 0 : index
    %54 = vector.load %arg7[%c0_18, %c0_19] : memref<8x128xf32, #tpu.memory_space<vmem>>, vector<8x128xf32>
    tpu.vector_store %arg7[%c0_18, %c0_19], %53 {strides = array<i32>} : memref<8x128xf32, #tpu.memory_space<vmem>>, vector<8x128xf32>,
    return
  }
  func.func @transform_0(%arg0: i32) -> (i32, i32) {
    %c0_i32 = arith.constant 0 : i32
    %c0_i32_0 = arith.constant 0 : i32
    return %arg0, %c0_i32 : i32, i32
  }
  func.func @transform_1(%arg0: i32) -> (i32, i32) {
    %c0_i32 = arith.constant 0 : i32
    %c0_i32_0 = arith.constant 0 : i32
    %c0_i32_1 = arith.constant 0 : i32
    return %c0_i32, %c0_i32_0 : i32, i32
  }
  func.func @transform_2(%arg0: i32) -> (i32, i32) {
    %c0_i32 = arith.constant 0 : i32
    %c0_i32_0 = arith.constant 0 : i32
    %c0_i32_1 = arith.constant 0 : i32
    return %c0_i32, %c0_i32_0 : i32, i32
  }
  func.func @transform_3(%arg0: i32) -> (i32, i32) {
    %c0_i32 = arith.constant 0 : i32
    %c0_i32_0 = arith.constant 0 : i32
    return %arg0, %c0_i32 : i32, i32
  }
  func.func @transform_4(%arg0: i32) -> (i32, i32) {
    %c0_i32 = arith.constant 0 : i32
    %c0_i32_0 = arith.constant 0 : i32
    return %arg0, %c0_i32 : i32, i32
  }
  func.func @transform_5(%arg0: i32) -> (i32, i32) {
    %c0_i32 = arith.constant 0 : i32
    %c0_i32_0 = arith.constant 0 : i32
    return %arg0, %c0_i32 : i32, i32
  }
  func.func @transform_6(%arg0: i32) -> (i32, i32) {
    %c0_i32 = arith.constant 0 : i32
    %c0_i32_0 = arith.constant 0 : i32
    return %arg0, %c0_i32 : i32, i32
  }
}

</mosaic_0001>

<bundles_post_ra>
// kernel: categorical_policy_forward.1
= control target key start
LH: loop header
LB: loop body
LE: loop exit
PB: predicated region body
PF: predicated region fallthrough
CT: control target
= control target key end

     0   :  { %12 = vsyncpa [#allocation3], 0  ;;  %v275_v3 = vmov 0.0|0.0   ;;  %vm276_vm0 = vmmov 0   ;;  %v277_v6 = vmov 0.0   ;;  %s369_s0 = inlined_call_operand.vmem [shape: f32[8,32], index: 0, kind: input, shape index: {}]   ;;  %s370_s1 = inlined_call_operand.vmem [shape: f32[32,128], index: 1, kind: input, shape index: {}]   ;;  %s371_s2 = inlined_call_operand.vmem [shape: f32[1,128], index: 2, kind: input, shape index: {}]   ;;  %s372_s3 = inlined_call_operand.vmem [shape: f32[8,128], index: 3, kind: input, shape index: {}]   ;;  %s373_s4 = inlined_call_operand.hbm [shape: f32[8,128], index: 4, kind: output, shape index: {0}]   ;;  %s374_s5 = inlined_call_operand.hbm [shape: f32[8,128], index: 5, kind: output, shape index: {1}]   ;;  %s375_s6 = inlined_call_operand.vmem [shape: f32[8,128], index: 6, kind: output, shape index: {2}]  }
   0x1   :  { %v23_v0 = vld [vmem:[%s370_s1] sm:$0xff]  ;;  %v24_v1 = vld [vmem:[%s370_s1 + $0x8] sm:$0xff]  ;;  %v25_v2 = vld [vmem:[%s370_s1 + $0x10] sm:$0xff]  ;;  %210 = vmatprep.subr.bf16.mxu0 %v275_v3  ;;  %207 = vmatprep.mubr.msk.f32.mxu0 %vm276_vm0, %v277_v6 }
   0x2   :  { %v211_v4 = vpack.c.bf16 %v24_v1, %v23_v0  ;;  %v26_v5 = vld [vmem:[%s370_s1 + $0x18] sm:$0xff] }
   0x3   :  { %13 = vsyncpa [#allocation5], 0  ;;  %v214_v7 = vpack.c.bf16 %v26_v5, %v25_v2  ;;  %v22_v8 = vld [vmem:[%s369_s0] sm:$0xff]  ;;  %vm34_vm1 = vcmask 261120   ;;  %v124_v15 = vlaneseq  ;;  %s278_s0 = smov [#allocation2]  }
   0x4   :  { %212 = vmatpush3.bf16.msra.mxu0 %v211_v4  ;;  %v191_v9 = vld [vmem:[%s371_s2] ss:$0 sm:$0xff]  ;;  %s165_s2 = sshll.u32 %s278_s0, 4  ;;  %s166_s2 = int_to_ptr.vmem [resolvable:$true] %s165_s2 }
   0x5   :  { %213 = vmatprep.subr.bf16.mxu0 %v275_v3  ;;  %v120_v11 = vld [vmem:[%s372_s3] sm:$0xff]  ;;  %v336_v16 = vand.u32 127, %v124_v15  ;;  %s279_s3 = smov [#allocation4]   ;;  %s227_s11 = scalar_lea.vmem %s166_s2, 128 }
   0x6   :  { %s175_s10 = sshll.u32 %s279_s3, 4  ;;  %p228_p0 = scmp.ne.s32.totalorder %s166_s2, %s227_s11  ;;  %s176_s10 = int_to_ptr.vmem [resolvable:$true] %s175_s10 }
   0x7   :  { %p232_p1 = scmp.lt.s32.totalorder %s166_s2, %s166_s2  ;;  %p233_p2 = scmp.lt.s32.totalorder %s227_s11, %s227_s11 }
   0x8   :  { %215 = vmatpush3.bf16.msra.mxu0 %v214_v7 }
   0x9   :  { %p234_p3 = por %p233_p2, %p232_p1 }
   0xb   :  { %208 = vmatmul.mubr.msk.f32.vlgmr.msra.gmra.mrb[0].mxu0 %vm34_vm1, %v22_v8  ;;  %p235_p4 = pnand %p234_p3, %p228_p0 }
  0xde   :  { %v104_v10 = vpop.f32.mrb[0].mxu0 }
  0xdf   :  { %v105_v12 = vadd.f32 %v191_v9, %v104_v10  ;;  %v209_v13 = vpop.f32.mrb[1].mxu0 }
  0xe1   :  { %v121_v14 = vadd.f32 %v120_v11, %v105_v12 }
  0xe3   :  { %122 = vmax.xlane.f32.xlu0 %v121_v14 }
  0xe7   :  { %108 = vmax.xlane.f32.xlu0 %v105_v12 }
 0x170   :  { %v123_v17 = vpop.xlane.xlu0 %122 }
 0x171   :  { %vm126_vm2 = vcmp.ge.f32.partialorder %v121_v14, %v123_v17 }
 0x172   :  { %v127_v18 = vsel %vm126_vm2, %v336_v16, 128 }
 0x173   :  { %v129_v19 = vshra.s32 %v127_v18, 16  ;;  %v128_v25 = vand.u32 65535, %v127_v18 }
 0x174   :  { %v109_v20 = vpop.xlane.xlu0 %108 }
 0x175   :  { %v110_v21 = vsub.f32 %v105_v12, %v109_v20  ;;  %v131_v22 = vcvt.s32.f32 %v129_v19  ;;  %v130_v27 = vcvt.s32.f32 %v128_v25 }
 0x177   :  { %v111_v23 = vmul.f32 1.442695, %v110_v21  ;;  %132 = vmin.xlane.f32.xlu1 %v131_v22 }
 0x179   :  { %221 = vpow2.f32 %v111_v23 }
 0x183   :  { %v222_v24 = vpop.eup %221 }
 0x184   :  { %113 = vadd.xlane.f32.xlu1 %v222_v24 }
 0x204   :  { %v133_v26 = vpop.xlane.xlu1 %132 }
 0x205   :  { %vm134_vm3 = vcmp.eq.f32.partialorder %v131_v22, %v133_v26  ;;  %v139_v33 = vcvt.f32.s32 %v133_v26 }
 0x206   :  { %v135_v28 = vsel %vm134_vm3, %v130_v27, inf }
 0x207   :  { %136 = vmin.xlane.f32.xlu0 %v135_v28  ;;  %v140_v36 = vshll.u32 %v139_v33, 16 }
 0x211   :  { %v114_v29 = vpop.xlane.xlu1 %113 }
 0x212   :  { %223 = vrcp.f32 %v114_v29 }
 0x213   :  { %225 = vlog2.f32 %v114_v29 }
 0x21c   :  { %v224_v30 = vpop.eup %223 }
 0x21d   :  { %v119_v31 = vmul.f32 %v224_v30, %v222_v24  ;;  %v226_v34 = vpop.eup %225 }
 0x21e   :  { %v116_v37 = vmul.f32 0.6931472, %v226_v34 }
 0x21f   :  { %v148_v32 = vmul.f32 %v119_v31, %v110_v21  ;;  %153 = vst [vmem:[#allocation4] sm:$0xff] %v119_v31 }
 0x220   :  { %v117_v40 = vsub.f32 %v110_v21, %v116_v37 }
 0x221   :  { %149 = vadd.xlane.f32.xlu1 %v148_v32 }
 0x294   :  { %v137_v35 = vpop.xlane.xlu0 %136 }
 0x295   :  { %v138_v38 = vcvt.f32.s32 %v137_v35 }
 0x297   :  { %v141_v39 = vadd.s32 %v140_v36, %v138_v38 }
 0x299   :  { %vm142_vm4 = vcmp.eq.s32.totalorder %v336_v16, %v141_v39 }
 0x29a   :  { %v193_v41 = vsel %vm142_vm4, 1.0, %v277_v6 }
 0x29b   :  { %v145_v42 = vmul.f32 %v193_v41, %v117_v40  ;;  %152 = vst [vmem:[#allocation2] sm:$0xff] %v193_v41 }
 0x29d   :  { %146 = vadd.xlane.f32.xlu0 %v145_v42 }
 0x29e   :  { %238 = shalt.err (!%p235_p4)
}
 0x29f   :  { %s239_s14 = scalar_lea.hbm %s373_s4, 128 }
 0x2a0   :  { %p240_p5 = scmp.ne.s32.totalorder %s373_s4, %s239_s14  ;;  %p243_p6 = scmp.lt.u32.totalorder %s239_s14, %s373_s4 }
 0x2a2   :  { %p245_p7 = pnand %p243_p6, %p240_p5 }
 0x2a4   :  { %248 = shalt.err (!%p245_p7)
}
 0x2a5   :  { %168 = dma.vmem_to_hbm [thread:$0]  %s166_s2, 128, %s373_s4, [#allocation3]  }
 0x2a6   :  { %s249_s21 = scalar_lea.vmem %s176_s10, 128  ;;  %p254_p9 = scmp.lt.s32.totalorder %s176_s10, %s176_s10 }
 0x2a7   :  { %p250_p8 = scmp.ne.s32.totalorder %s176_s10, %s249_s21  ;;  %p255_p10 = scmp.lt.s32.totalorder %s249_s21, %s249_s21 }
 0x2a9   :  { %p256_p11 = por %p255_p10, %p254_p9 }
 0x2ab   :  { %p257_p12 = pnand %p256_p11, %p250_p8 }
 0x2ad   :  { %260 = shalt.err (!%p257_p12)
}
 0x2ae   :  { %s261_s24 = scalar_lea.hbm %s374_s5, 128 }
 0x2af   :  { %p262_p13 = scmp.ne.s32.totalorder %s374_s5, %s261_s24  ;;  %p265_p0 = scmp.lt.u32.totalorder %s261_s24, %s374_s5 }
 0x2b1   :  { %p267_p1 = pnand %p265_p0, %p262_p13 }
 0x2b3   :  { %270 = shalt.err (!%p267_p1)
}
 0x2b4   :  { %178 = dma.vmem_to_hbm [thread:$0]  %s176_s10, 128, %s374_s5, [#allocation5]   ;;  %v150_v43 = vpop.xlane.xlu1 %149  ;;  %vm155_vm5 = vcmp.eq.s32.totalorder %v336_v16, 1  ;;  %vm154_vm6 = vcmp.eq.s32.totalorder %v336_v16, 0 }
 0x2b5   :  { %v151_v44 = vsub.f32 %v116_v37, %v150_v43 }
 0x2b7   :  { %v156_v45 = vsel %vm155_vm5, %v151_v44, 0.0 }
 0x32a   :  { %v147_v46 = vpop.xlane.xlu0 %146 }
 0x32b   :  { %v157_v47 = vsel %vm154_vm6, %v147_v46, %v156_v45 }
 0x32c   :  { %158 = vst [vmem:[%s375_s6] sm:$0xff] %v157_v47 }
 0x32d   :  { %271 = dma.done.wait [#allocation3], 128  }
 0x32e   :  { %272 = vsyncadd [#allocation3], 4294967168 }
 0x32f   :  { %273 = dma.done.wait [#allocation5], 128  }
 0x330   :  { %274 = vsyncadd [#allocation5], 4294967168 }
 0x331   :  { %189 = vsyncpa [#allocation3], 1 }
 0x332   :  { %190 = vsyncpa [#allocation5], 1 }

</bundles_post_ra>
